<compile_context>
chip_gen: v7x
topology: tpu7x:2x2x1
jax: 0.10.0
libtpu: 0.0.40
codegen_flags: <defaults>
</compile_context>

<pallas_src>
import functools

import jax
import jax.numpy as jnp
from jax.experimental import pallas as pl
from jax.experimental.pallas import tpu as pltpu


# ----------------------------------------------------------------------------
# helpers
# ----------------------------------------------------------------------------

def _cdiv(a, b):
    return -(-a // b)


def _vmem_budget_bytes():
    """Usable per-core VMEM budget; leave ~25% headroom below physical."""
    try:
        cap = int(pltpu.get_tpu_info().vmem_capacity_bytes)
    except Exception:
        cap = 64 * 1024 * 1024   # v7x is the smallest generation; safe everywhere
    return (cap * 3) // 4


def _uniform(key, shape, bound):
    return jax.random.uniform(key, shape, jnp.float32, -bound, bound)


def _plan_spatial_tiling(hw, c, itemsize, max_tile_bytes, groups):
    """Split (padded) HW into groups * n_t equal lane-dense tiles.

    Returns (hw_padded, tile_hw, n_t_per_group).  tile_hw is a multiple of 128
    and c * tile_hw * itemsize <= max_tile_bytes (unless that cap is smaller
    than one 128-lane chunk).  Padding is < `groups * n_t` chunks of 128 lanes.
    """
    n128 = _cdiv(hw, 128)
    cap = max(1, max_tile_bytes // (c * 128 * itemsize))
    total = groups * _cdiv(_cdiv(n128, cap), groups)
    tile_n128 = _cdiv(n128, total)
    hw_padded = total * tile_n128 * 128
    return hw_padded, tile_n128 * 128, total // groups


# ----------------------------------------------------------------------------
# kernel: single-pass fused SCSE (whole (C, HW) slab resident in VMEM)
# ----------------------------------------------------------------------------

def _scse_fused_kernel(x_ref, w1t_ref, b1_ref, w2_ref, b2_ref, ws_ref, bs_ref,
                       out_ref, *, inv_hw):
    x = x_ref[0].astype(jnp.float32)                          # (C, T)

    # channel mean (spatial zero-padding contributes nothing; divide by true HW)
    mean = jnp.sum(x, axis=-1, keepdims=True) * inv_hw        # (C, 1)

    # cSE: tiny MLP on the pooled channel vector (pure VPU/XLU, no transposes)
    hidden = jnp.maximum(
        jnp.sum(w1t_ref[...] * mean, axis=0, keepdims=True) + b1_ref[...], 0.0)
    cgate = jax.nn.sigmoid(
        jnp.sum(w2_ref[...] * hidden, axis=1, keepdims=True) + b2_ref[...])   # (C, 1)

    # sSE: 1x1 conv over channels per pixel (sublane reduction over C)
    sgate = jax.nn.sigmoid(
        jnp.sum(x * ws_ref[...], axis=0, keepdims=True) + bs_ref[...])        # (1, T)

    # x * cSE + x * sSE == x * (cSE + sSE)
    out_ref[0] = (x * (cgate + sgate)).astype(out_ref.dtype)


# ----------------------------------------------------------------------------
# kernel (two-pass path, pass 1): per-(b, group, c) partial sums over spatial
# ----------------------------------------------------------------------------

def _partial_sum_kernel(x_ref, out_ref):
    t = pl.program_id(2)

    @pl.when(t == 0)
    def _():
        out_ref[...] = jnp.zeros_like(out_ref)

    x = x_ref[0].astype(jnp.float32)                          # (C, tile_hw)
    out_ref[0, 0] = out_ref[0, 0] + jnp.sum(x, axis=-1, keepdims=True)


# ----------------------------------------------------------------------------
# kernel (two-pass path, pass 2): sSE gate + combine (cSE gate precomputed)
# ----------------------------------------------------------------------------

def _scse_apply_kernel(x_ref, cgate_ref, ws_ref, bs_ref, out_ref):
    x = x_ref[0].astype(jnp.float32)                          # (C, tile_hw)
    sgate = jax.nn.sigmoid(
        jnp.sum(x * ws_ref[...], axis=0, keepdims=True) + bs_ref[...])        # (1, tile)
    out_ref[0] = (x * (cgate_ref[0] + sgate)).astype(out_ref.dtype)


# ----------------------------------------------------------------------------
# modules
# ----------------------------------------------------------------------------

class _Identity:
    def __init__(self, **params):
        del params

    def __call__(self, x):
        # True no-op: no copy kernel, no HBM traffic.
        return x


class SCSEModule:
    _GROUPS = 2  # lets both v7x TensorCores stream pass 1 even at batch size 1

    def __init__(self, in_channels, reduction=16, key=None,
                 max_tile_bytes=4 * 1024 * 1024, force_two_pass=False):
        c = int(in_channels)
        c_mid = c // reduction
        assert c_mid >= 1, "in_channels // reduction must be >= 1"
        self.c = c
        self.c_mid = c_mid
        self.max_tile_bytes = int(max_tile_bytes)
        self.force_two_pass = bool(force_two_pass)   # test hook (dispatch only)
        self.vmem_budget = _vmem_budget_bytes()

        if key is None:
            key = jax.random.PRNGKey(0)
        k1, k2, k3, k4, k5, k6 = jax.random.split(key, 6)
        b1 = 1.0 / (c ** 0.5)
        b2 = 1.0 / (c_mid ** 0.5)
        # canonical (PyTorch 1x1-conv) layouts, used by the pure-JAX reference
        self.w1 = _uniform(k1, (c_mid, c), b1)     # conv(C -> Cmid)
        self.b1 = _uniform(k2, (c_mid,), b1)
        self.w2 = _uniform(k3, (c, c_mid), b2)     # conv(Cmid -> C)
        self.b2 = _uniform(k4, (c,), b2)
        self.ws = _uniform(k5, (c,), b1)           # sSE conv(C -> 1)
        self.bs = _uniform(k6, (), b1)

        # kernel-friendly layouts (no in-kernel transposes needed)
        self._w1t = self.w1.T                      # (C, Cmid)
        self._b1_row = self.b1.reshape(1, c_mid)   # (1, Cmid)
        self._b2_col = self.b2.reshape(c, 1)       # (C, 1)
        self._ws_col = self.ws.reshape(c, 1)       # (C, 1)
        self._bs_11 = self.bs.reshape(1, 1)        # (1, 1)

    # ---- single-pass fused path ---------------------------------------------
    def _single_pass(self, x3p, hw, out_dtype):
        B, C, HWp = x3p.shape
        c_mid = self.c_mid
        return pl.pallas_call(
            functools.partial(_scse_fused_kernel, inv_hw=float(1.0 / hw)),
            out_shape=jax.ShapeDtypeStruct((B, C, HWp), out_dtype),
            grid=(B,),
            in_specs=[
                pl.BlockSpec((1, C, HWp), lambda b: (b, 0, 0)),   # x
                pl.BlockSpec((C, c_mid), lambda b: (0, 0)),       # w1^T
                pl.BlockSpec((1, c_mid), lambda b: (0, 0)),       # b1
                pl.BlockSpec((C, c_mid), lambda b: (0, 0)),       # w2
                pl.BlockSpec((C, 1), lambda b: (0, 0)),           # b2
                pl.BlockSpec((C, 1), lambda b: (0, 0)),           # ws
                pl.BlockSpec((1, 1), lambda b: (0, 0)),           # bs
            ],
            out_specs=pl.BlockSpec((1, C, HWp), lambda b: (b, 0, 0)),
            compiler_params=pltpu.CompilerParams(
                dimension_semantics=("parallel",),
                vmem_limit_bytes=self.vmem_budget),
        )(x3p, self._w1t, self._b1_row, self.w2, self._b2_col,
          self._ws_col, self._bs_11)

    # ---- two-pass streaming path --------------------------------------------
    def _two_pass(self, x3p, hw, tile_hw, n_t, out_dtype):
        B, C, HWp = x3p.shape
        G = self._GROUPS
        itemsize = jnp.dtype(x3p.dtype).itemsize
        tile_bytes = C * tile_hw * itemsize

        # pass 1: per-(b, g, c) partial sums (reduction axis last / arbitrary)
        partials = pl.pallas_call(
            _partial_sum_kernel,
            out_shape=jax.ShapeDtypeStruct((B, G, C, 1), jnp.float32),
            grid=(B, G, n_t),
            in_specs=[pl.BlockSpec((1, C, tile_hw),
                                   lambda b, g, t: (b, 0, g * n_t + t))],
            out_specs=pl.BlockSpec((1, 1, C, 1), lambda b, g, t: (b, g, 0, 0)),
            compiler_params=pltpu.CompilerParams(
                dimension_semantics=("parallel", "parallel", "arbitrary"),
                vmem_limit_bytes=min(self.vmem_budget,
                                     2 * tile_bytes + (4 << 20))),
        )(x3p)

        # tiny cSE MLP hoisted out of the per-tile loop ((B, C)-sized, plain JAX)
        pooled = jnp.sum(partials[:, :, :, 0], axis=1) * (1.0 / hw)     # (B, C)
        hidden = jax.nn.relu(pooled @ self.w1.T + self.b1)              # (B, Cmid)
        cgate = jax.nn.sigmoid(hidden @ self.w2.T + self.b2)            # (B, C)
        cgate = cgate.astype(jnp.float32)[:, :, None]                   # (B, C, 1)

        # pass 2: sSE gate + combine, fully parallel grid, lane-dense stores
        return pl.pallas_call(
            _scse_apply_kernel,
            out_shape=jax.ShapeDtypeStruct((B, C, HWp), out_dtype),
            grid=(B, G * n_t),
            in_specs=[
                pl.BlockSpec((1, C, tile_hw), lambda b, t: (b, 0, t)),  # x
                pl.BlockSpec((1, C, 1), lambda b, t: (b, 0, 0)),        # cgate
                pl.BlockSpec((C, 1), lambda b, t: (0, 0)),              # ws
                pl.BlockSpec((1, 1), lambda b, t: (0, 0)),              # bs
            ],
            out_specs=pl.BlockSpec((1, C, tile_hw), lambda b, t: (b, 0, t)),
            compiler_params=pltpu.CompilerParams(
                dimension_semantics=("parallel", "parallel"),
                vmem_limit_bytes=min(self.vmem_budget,
                                     4 * tile_bytes + (4 << 20))),
        )(x3p, cgate, self._ws_col, self._bs_11)

    def __call__(self, x):
        B, C, H, W = x.shape
        assert C == self.c
        HW = H * W
        itemsize = jnp.dtype(x.dtype).itemsize

        hwp_single = _cdiv(HW, 128) * 128
        hwp_tiled, tile_hw, n_t = _plan_spatial_tiling(
            HW, C, itemsize, self.max_tile_bytes, self._GROUPS)

        # single-pass gate: double-buffered in + out slabs (+ possible f32
        # staging for non-f32 inputs) must fit the per-chip VMEM budget
        slab = C * hwp_single * itemsize
        extra = C * hwp_single * 4 if x.dtype != jnp.float32 else 0
        need = 4 * slab + extra + (2 << 20)
        use_single = (not self.force_two_pass) and need <= self.vmem_budget

        hwp = hwp_single if use_single else hwp_tiled
        x3 = x.reshape(B, C, HW)
        if hwp != HW:
            # zero padding: sums unaffected, padded outputs sliced away below
            x3 = jnp.pad(x3, ((0, 0), (0, 0), (0, hwp - HW)))

        if use_single:
            out = self._single_pass(x3, HW, x.dtype)
        else:
            out = self._two_pass(x3, HW, tile_hw, n_t, x.dtype)

        if hwp != HW:
            out = out[:, :, :HW]
        return out.reshape(B, C, H, W)


class Attention:
    """Mirror of segmentation_models_pytorch Attention (Identity / SCSE)."""

    def __init__(self, name, **params):
        if name is None:
            self.attention = _Identity(**params)
        elif name == "scse":
            self.attention = SCSEModule(**params)
        elif name in ("cbam", "ACmix", "Axial", "CrissCrossAttention",
                      "CoordAttention", "SimAM"):
            # TODO(synk): these attention variants depend on classes not provided
            # in the reference module; only Identity and SCSE are ported.
            raise NotImplementedError(
                "Attention '{}' is not ported to Pallas".format(name))
        else:
            raise ValueError("Attention {} is not implemented".format(name))

    def __call__(self, x):
        return self.attention(x)


# ----------------------------------------------------------------------------
# pure-JAX reference (for correctness checks)
# ----------------------------------------------------------------------------

def _scse_ref(m, x):
    pooled = jnp.mean(x, axis=(2, 3))                              # (B, C)
    hid = jax.nn.relu(pooled @ m.w1.T + m.b1)                      # (B, Cmid)
    cse = jax.nn.sigmoid(hid @ m.w2.T + m.b2)[:, :, None, None]    # (B, C, 1, 1)
    sse = jax.nn.sigmoid(
        jnp.einsum("bchw,c->bhw", x, m.ws) + m.bs)[:, None, :, :]  # (B, 1, H, W)
    return x * cse + x * sse


# ----------------------------------------------------------------------------

if __name__ == "__main__":
    key = jax.random.PRNGKey(0)
    kx, kp, kx2, kx3, kx4 = jax.random.split(key, 5)

    # ---- identity / None path (true no-op) ---------------------------------
    B, C, H, W = 2, 16, 16, 16
    x = jax.random.normal(kx, (B, C, H, W), dtype=jnp.float32)
    attn_id = Attention(None)
    out_id = jax.block_until_ready(attn_id(x))
    assert out_id.shape == x.shape
    assert jnp.array_equal(out_id, x)

    # ---- SCSE, single-pass fused path (HW multiple of 128) ------------------
    attn = Attention("scse", in_channels=C, reduction=4, key=kp)
    out = jax.block_until_ready(attn(x))
    ref = _scse_ref(attn.attention, x)
    assert out.shape == ref.shape, (out.shape, ref.shape)
    assert jnp.allclose(out, ref, atol=1e-5, rtol=1e-5)

    # ---- SCSE, single-pass with HW not a multiple of 128 (padding path) -----
    x3 = jax.random.normal(kx3, (2, 8, 7, 7), dtype=jnp.float32)
    attn_pad = Attention("scse", in_channels=8, reduction=4, key=kp)
    out3 = jax.block_until_ready(attn_pad(x3))
    ref3 = _scse_ref(attn_pad.attention, x3)
    assert out3.shape == ref3.shape
    assert jnp.allclose(out3, ref3, atol=1e-5, rtol=1e-5)

    # ---- SCSE, forced two-pass streaming path (accumulator + hoisted MLP) ---
    x2 = jax.random.normal(kx2, (B, C, 32, 32), dtype=jnp.float32)
    attn_tp = Attention("scse", in_channels=C, reduction=4, key=kp,
                        max_tile_bytes=16 * 1024, force_two_pass=True)
    out2 = jax.block_until_ready(attn_tp(x2))
    ref2 = _scse_ref(attn_tp.attention, x2)
    assert out2.shape == ref2.shape
    assert jnp.allclose(out2, ref2, atol=1e-5, rtol=1e-5)

    # ---- SCSE, forced two-pass with padding and batch=1 ----------------------
    x4 = jax.random.normal(kx4, (1, 16, 10, 10), dtype=jnp.float32)
    attn_tp2 = Attention("scse", in_channels=16, reduction=4, key=kp,
                         max_tile_bytes=16 * 1024, force_two_pass=True)
    out4 = jax.block_until_ready(attn_tp2(x4))
    ref4 = _scse_ref(attn_tp2.attention, x4)
    assert out4.shape == ref4.shape
    assert jnp.allclose(out4, ref4, atol=1e-5, rtol=1e-5)

    print("KERNEL_OK")
</pallas_src>

<mosaic_0001>
module attributes {stable_mosaic.version = 11 : i64} {
  func.func @_scse_fused_kernel(%arg0: i32, %arg1: memref<1x16x256xf32, #tpu.memory_space<vmem>>, %arg2: memref<16x4xf32, #tpu.memory_space<vmem>>, %arg3: memref<1x4xf32, #tpu.memory_space<vmem>>, %arg4: memref<16x4xf32, #tpu.memory_space<vmem>>, %arg5: memref<16x1xf32, #tpu.memory_space<vmem>>, %arg6: memref<16x1xf32, #tpu.memory_space<vmem>>, %arg7: memref<1x1xf32, #tpu.memory_space<vmem>>, %arg8: memref<1x16x256xf32, #tpu.memory_space<vmem>>) attributes {dimension_semantics = [#tpu.dimension_semantics<parallel>], iteration_bounds = array<i64: 2>, scalar_prefetch = 0 : i64, scratch_operands = 0 : i64, tpu.core_type = #tpu.core_type<tc>, window_params = [{transform_indices = @transform_0, window_bounds = array<i64: 1, 16, 256>}, {pipeline_mode = #tpu.pipeline_mode<synchronous>, transform_indices = @transform_1, window_bounds = array<i64: 16, 4>}, {pipeline_mode = #tpu.pipeline_mode<synchronous>, transform_indices = @transform_2, window_bounds = array<i64: 1, 4>}, {pipeline_mode = #tpu.pipeline_mode<synchronous>, transform_indices = @transform_3, window_bounds = array<i64: 16, 4>}, {pipeline_mode = #tpu.pipeline_mode<synchronous>, transform_indices = @transform_4, window_bounds = array<i64: 16, 1>}, {pipeline_mode = #tpu.pipeline_mode<synchronous>, transform_indices = @transform_5, window_bounds = array<i64: 16, 1>}, {pipeline_mode = #tpu.pipeline_mode<synchronous>, transform_indices = @transform_6, window_bounds = array<i64: 1, 1>}, {transform_indices = @transform_7, window_bounds = array<i64: 1, 16, 256>}]} {
    %c0 = arith.constant 0 : index
    %c0_0 = arith.constant 0 : index
    %c0_1 = arith.constant 0 : index
    %0 = vector.load %arg1[%c0, %c0_0, %c0_1] : memref<1x16x256xf32, #tpu.memory_space<vmem>>, vector<1x16x256xf32>
    %1 = vector.shape_cast %0 : vector<1x16x256xf32> to vector<16x256xf32>
    %cst = arith.constant dense<0.000000e+00> : vector<16xf32>
    %2 = vector.multi_reduction <add>, %1, %cst [1] : vector<16x256xf32> to vector<16xf32>
    %3 = vector.shape_cast %2 : vector<16xf32> to vector<16x1xf32>
    %cst_2 = arith.constant 3.906250e-03 : f32
    %4 = vector.broadcast %cst_2 : f32 to vector<16x1xf32>
    %5 = arith.mulf %3, %4 : vector<16x1xf32>
    %c0_3 = arith.constant 0 : index
    %c0_4 = arith.constant 0 : index
    %6 = vector.load %arg2[%c0_3, %c0_4] : memref<16x4xf32, #tpu.memory_space<vmem>>, vector<16x4xf32>
    %7 = vector.broadcast %5 : vector<16x1xf32> to vector<16x4xf32>
    %8 = arith.mulf %6, %7 : vector<16x4xf32>
    %cst_5 = arith.constant dense<0.000000e+00> : vector<4xf32>
    %9 = vector.multi_reduction <add>, %8, %cst_5 [0] : vector<16x4xf32> to vector<4xf32>
    %10 = vector.shape_cast %9 : vector<4xf32> to vector<1x4xf32>
    %c0_6 = arith.constant 0 : index
    %c0_7 = arith.constant 0 : index
    %11 = vector.load %arg3[%c0_6, %c0_7] : memref<1x4xf32, #tpu.memory_space<vmem>>, vector<1x4xf32>
    %12 = arith.addf %10, %11 : vector<1x4xf32>
    %cst_8 = arith.constant 0.000000e+00 : f32
    %13 = vector.broadcast %cst_8 : f32 to vector<1x4xf32>
    %14 = arith.maximumf %12, %13 : vector<1x4xf32>
    %c0_9 = arith.constant 0 : index
    %c0_10 = arith.constant 0 : index
    %15 = vector.load %arg4[%c0_9, %c0_10] : memref<16x4xf32, #tpu.memory_space<vmem>>, vector<16x4xf32>
    %16 = vector.broadcast %14 : vector<1x4xf32> to vector<16x4xf32>
    %17 = arith.mulf %15, %16 : vector<16x4xf32>
    %cst_11 = arith.constant dense<0.000000e+00> : vector<16xf32>
    %18 = vector.multi_reduction <add>, %17, %cst_11 [1] : vector<16x4xf32> to vector<16xf32>
    %19 = vector.shape_cast %18 : vector<16xf32> to vector<16x1xf32>
    %c0_12 = arith.constant 0 : index
    %c0_13 = arith.constant 0 : index
    %20 = vector.load %arg5[%c0_12, %c0_13] : memref<16x1xf32, #tpu.memory_space<vmem>>, vector<16x1xf32>
    %21 = arith.addf %19, %20 : vector<16x1xf32>
    %22 = arith.negf %21 : vector<16x1xf32>
    %23 = math.exp %22 : vector<16x1xf32>
    %cst_14 = arith.constant 1.000000e+00 : f32
    %24 = vector.broadcast %cst_14 : f32 to vector<16x1xf32>
    %25 = arith.addf %24, %23 : vector<16x1xf32>
    %26 = arith.divf %24, %25 : vector<16x1xf32>
    %c0_15 = arith.constant 0 : index
    %c0_16 = arith.constant 0 : index
    %27 = vector.load %arg6[%c0_15, %c0_16] : memref<16x1xf32, #tpu.memory_space<vmem>>, vector<16x1xf32>
    %28 = vector.broadcast %27 : vector<16x1xf32> to vector<16x256xf32>
    %29 = arith.mulf %1, %28 : vector<16x256xf32>
    %cst_17 = arith.constant dense<0.000000e+00> : vector<256xf32>
    %30 = vector.multi_reduction <add>, %29, %cst_17 [0] : vector<16x256xf32> to vector<256xf32>
    %31 = vector.shape_cast %30 : vector<256xf32> to vector<1x256xf32>
    %c0_18 = arith.constant 0 : index
    %c0_19 = arith.constant 0 : index
    %32 = vector.load %arg7[%c0_18, %c0_19] : memref<1x1xf32, #tpu.memory_space<vmem>>, vector<1x1xf32>
    %33 = vector.broadcast %32 : vector<1x1xf32> to vector<1x256xf32>
    %34 = arith.addf %31, %33 : vector<1x256xf32>
    %35 = arith.negf %34 : vector<1x256xf32>
    %36 = math.exp %35 : vector<1x256xf32>
    %cst_20 = arith.constant 1.000000e+00 : f32
    %37 = vector.broadcast %cst_20 : f32 to vector<1x256xf32>
    %38 = arith.addf %37, %36 : vector<1x256xf32>
    %39 = arith.divf %37, %38 : vector<1x256xf32>
    %40 = vector.broadcast %26 : vector<16x1xf32> to vector<16x256xf32>
    %41 = vector.broadcast %39 : vector<1x256xf32> to vector<16x256xf32>
    %42 = arith.addf %40, %41 : vector<16x256xf32>
    %43 = arith.mulf %1, %42 : vector<16x256xf32>
    %c0_21 = arith.constant 0 : index
    %c0_22 = arith.constant 0 : index
    %c0_23 = arith.constant 0 : index
    %44 = vector.load %arg8[%c0_21, %c0_22, %c0_23] : memref<1x16x256xf32, #tpu.memory_space<vmem>>, vector<1x16x256xf32>
    %45 = vector.shape_cast %44 : vector<1x16x256xf32> to vector<16x256xf32>
    %46 = vector.shape_cast %43 : vector<16x256xf32> to vector<1x16x256xf32>
    tpu.vector_store %arg8[%c0_21, %c0_22, %c0_23], %46 {strides = array<i32>} : memref<1x16x256xf32, #tpu.memory_space<vmem>>, vector<1x16x256xf32>,
    return
  }
  func.func @transform_0(%arg0: i32) -> (i32, i32, i32) {
    %c0_i32 = arith.constant 0 : i32
    %c0_i32_0 = arith.constant 0 : i32
    %c0_i32_1 = arith.constant 0 : i32
    return %arg0, %c0_i32, %c0_i32_0 : i32, i32, i32
  }
  func.func @transform_1(%arg0: i32) -> (i32, i32) {
    %c0_i32 = arith.constant 0 : i32
    %c0_i32_0 = arith.constant 0 : i32
    %c0_i32_1 = arith.constant 0 : i32
    return %c0_i32, %c0_i32_0 : i32, i32
  }
  func.func @transform_2(%arg0: i32) -> (i32, i32) {
    %c0_i32 = arith.constant 0 : i32
    %c0_i32_0 = arith.constant 0 : i32
    %c0_i32_1 = arith.constant 0 : i32
    return %c0_i32, %c0_i32_0 : i32, i32
  }
  func.func @transform_3(%arg0: i32) -> (i32, i32) {
    %c0_i32 = arith.constant 0 : i32
    %c0_i32_0 = arith.constant 0 : i32
    %c0_i32_1 = arith.constant 0 : i32
    return %c0_i32, %c0_i32_0 : i32, i32
  }
  func.func @transform_4(%arg0: i32) -> (i32, i32) {
    %c0_i32 = arith.constant 0 : i32
    %c0_i32_0 = arith.constant 0 : i32
    %c0_i32_1 = arith.constant 0 : i32
    return %c0_i32, %c0_i32_0 : i32, i32
  }
  func.func @transform_5(%arg0: i32) -> (i32, i32) {
    %c0_i32 = arith.constant 0 : i32
    %c0_i32_0 = arith.constant 0 : i32
    %c0_i32_1 = arith.constant 0 : i32
    return %c0_i32, %c0_i32_0 : i32, i32
  }
  func.func @transform_6(%arg0: i32) -> (i32, i32) {
    %c0_i32 = arith.constant 0 : i32
    %c0_i32_0 = arith.constant 0 : i32
    %c0_i32_1 = arith.constant 0 : i32
    return %c0_i32, %c0_i32_0 : i32, i32
  }
  func.func @transform_7(%arg0: i32) -> (i32, i32, i32) {
    %c0_i32 = arith.constant 0 : i32
    %c0_i32_0 = arith.constant 0 : i32
    %c0_i32_1 = arith.constant 0 : i32
    return %arg0, %c0_i32, %c0_i32_0 : i32, i32, i32
  }
}

</mosaic_0001>

<bundles_post_ra>
// kernel: tpu_custom_call.1
= control target key start
LH: loop header
LB: loop body
LE: loop exit
PB: predicated region body
PF: predicated region fallthrough
CT: control target
= control target key end

     0   :  { %s833_s0 = inlined_call_operand.vmem [shape: f32[2,16,256], index: 0, kind: input, shape index: {}]   ;;  %s834_s1 = inlined_call_operand.vmem [shape: f32[16,4], index: 1, kind: input, shape index: {}]   ;;  %s835_s2 = inlined_call_operand.vmem [shape: f32[1,4], index: 2, kind: input, shape index: {}]   ;;  %s836_s3 = inlined_call_operand.vmem [shape: f32[16,4], index: 3, kind: input, shape index: {}]   ;;  %s837_s4 = inlined_call_operand.vmem [shape: f32[16,1], index: 4, kind: input, shape index: {}]   ;;  %s838_s5 = inlined_call_operand.vmem [shape: f32[16,1], index: 5, kind: input, shape index: {}]   ;;  %s839_s6 = inlined_call_operand.<no memory space> [shape: f32[1,1], index: 6, kind: input, shape index: {}]   ;;  %s840_s7 = inlined_call_operand.hbm [shape: f32[2,16,256], index: 7, kind: output, shape index: {}]  }
   0x1   :  { %v12_v0 = vstv %s839_s6 }
   0x2   :  { %13 = vst [vmem:[#allocation2] sm:$0x1] %v12_v0 }
   0x3   :  { %14 = vsyncpa [#allocation4], 0 }
   0x4   :  { %16 = vsyncpa [#allocation4 + $0x1], 0  ;;  %s679_s26 = smov 0   ;;  %s681_s27 = smov 0  }
   0x5   :  { %s683_s28 = smov 0   ;;  %s685_s29 = smov 0  }
   0x6 LB: > { %s700_s6 = sadd.s32 4294967295, %s630_s29   ;;  %s490_s30 = sadd.s32 4294967294, %s630_s29   ;;  %s630_s29 = sphi %s685_s29, %s846_s29   ;;  %s626_s28 = sphi %s683_s28, %s845_s28   ;;  %s622_s27 = sphi %s681_s27, %s844_s27   ;;  %s618_s26 = sphi %s679_s26, %s843_s26  }
   0x7   : > { %s704_s8 = sadd.s32 1, %s630_s29   ;;  %s181_s9 = sadd.s32 1, %s626_s28 }
   0x8   : > { %s178_s10 = ssub.s32 %s630_s29, %s704_s8  ;;  %p191_p0 = scmp.ne.s32.totalorder %s626_s28, %s622_s27 }
   0x9   : > { %p179_p1 = scmp.eq.s32.totalorder %s178_s10, 0  ;;  %p192_p2 = scmp.eq.s32.totalorder %s700_s6, 1 }
   0xa   : > { %p197_p3 = scmp.ne.s32.totalorder %s622_s27, %s618_s26  ;;  %p198_p4 = scmp.eq.s32.totalorder %s490_s30, 1 }
   0xb   : > { %s715_s11 = scalar_select %p179_p1, %s626_s28, %s181_s9  }
   0xc   : > { %p717_p5 = por %p192_p2, %p191_p0  ;;  %p721_p6 = por %p198_p4, %p197_p3 }
   0xd   : > { %p493_p7 = scmp.ge.s32.totalorder %s630_s29, 1  ;;  %p242_p8 = scmp.lt.s32.totalorder %s630_s29, 3 }
   0xf   : > { %p243_p9 = pnand %p493_p7, %p242_p8 }
  0x10   : > { %p274_p10 = scmp.lt.s32.totalorder (!%p243_p9), %s700_s6, 1  ;;  %v338_v7 = vld [vmem:[%s838_s5] sm:$0xff] (!%p243_p9)  ;;  %v632_v8 = vmov (!%p243_p9), 0   ;;  %v292_v12 = vld [vmem:[%s834_s1 + $0x8] sm:$0xff] (!%p243_p9)  ;;  %vm295_vm0 = vcmask (!%p243_p9), 31744   ;;  %v310_v23 = vlaneseq (!%p243_p9)  ;;  %s271_s22 = sand.u32 (!%p243_p9), 1, %s622_s27  }
  0x11   : > { %246 = sbr.rel (%p243_p9) target bundleno = 526 (0x20e), region = 48  ;;  %551 = vset.pattern.permute.xlu1 (!%p243_p9), %v632_v8  ;;  %550 = vset.pattern.permute.xlu0 (!%p243_p9), %v632_v8  ;;  %v291_v11 = vld [vmem:[%s834_s1] sm:$0xff] (!%p243_p9)  ;;  %v309_v34 = vld [vmem:[%s836_s3 + $0x8] sm:$0xff] (!%p243_p9)  ;;  %s494_s23 = sshll.u32 (!%p243_p9), %s271_s22, 5 }
  0x12   : > { %v311_v26 = vshrl.u32 (!%p243_p9), %v310_v23, 7  ;;  %v305_v27 = vld [vmem:[%s835_s2] sm:$0x1] (!%p243_p9)  ;;  %v339_v39 = vld [vmem:[%s838_s5 + $0x8] sm:$0xff] (!%p243_p9)  ;;  %s273_s24 = scalar_lea.vmem (!%p243_p9), [#allocation3], %s494_s23  ;;  %s507_s30 = sshll.u32 (!%p243_p9), %s700_s6, 9 }
  0x13   : > { %v308_v32 = vld [vmem:[%s836_s3] sm:$0xff] (!%p243_p9)  ;;  %v323_v44 = vld [vmem:[%s837_s4 + $0x8] sm:$0xff] (!%p243_p9)  ;;  %s428_s25 = sshll.u32 (!%p243_p9), %s273_s24, 4  ;;  %s633_s16 = smov (!%p243_p9), [#allocation3]   ;;  %s783_s25 = int_to_ptr.vmem [resolvable:$true] %s428_s25 }
  0x14   : > { %v312_v30 = vsub.s32 (!%p243_p9), 0, %v311_v26  ;;  %v368_v40 = vld [vmem:[#allocation2] sm:$0x1] (!%p243_p9)  ;;  %s572_s17 = sshll.u32 (!%p243_p9), %s633_s16, 4  ;;  %s573_s17 = int_to_ptr.vmem [resolvable:$false] %s572_s17 }
  0x15   : > { %v322_v41 = vld [vmem:[%s837_s4] sm:$0xff] (!%p243_p9)  ;;  %p575_p0 = scmp.lt.s32.totalorder (!%p243_p9), %s783_s25, %s573_s17 }
  0x18   : > { %s275_s14 = scalar_select %p274_p10, %s700_s6, 1 }
  0x19   : > { %s792_s6 = scalar_lea.sflag [#allocation4], %s271_s22 }
  0x1a   : > { %s506_s15 = sshll.u32 %s275_s14, 5  ;;  %s788_s14 = scalar_lea.hbm %s840_s7, %s507_s30 }
  0x1b   : > { %s278_s18 = scalar_lea.vmem %s833_s0, %s506_s15  ;;  %s568_s15 = scalar_lea.vmem %s783_s25, 512 }
  0x1c   : > { %v732_v1 = vld [vmem:[%s278_s18] sm:$0xff]  ;;  %v734_v2 = vld [vmem:[%s278_s18 + $0x8] sm:$0xff]  ;;  %v736_v3 = vld [vmem:[%s278_s18 + $0x10] sm:$0xff]  ;;  %p569_p11 = scmp.ne.s32.totalorder %s783_s25, %s568_s15 }
  0x1d   : > { %v283_v4 = vadd.f32 %v734_v2, %v732_v1  ;;  %v740_v5 = vld [vmem:[%s278_s18 + $0x18] sm:$0xff]  ;;  %s574_s18 = scalar_lea.vmem %s573_s17, 1024 }
  0x1e   : > { %v286_v6 = vadd.f32 %v740_v5, %v736_v3  ;;  %p570_p12 = pnand %p569_p11, %p717_p5  ;;  %p576_p1 = scmp.lt.s32.totalorder %s574_s18, %s568_s15 }
  0x1f   : > { %284 = vadd.xlane.f32.xlu0 %v283_v4 }
  0x20   : > { %p571_p13 = pneg %p570_p12  ;;  %p577_p2 = por %p576_p1, %p575_p0 }
  0x22   : > { %p578_p3 = pnand %p577_p2, %p571_p13 }
  0x23   : > { %287 = vadd.xlane.f32.xlu0 %v286_v6 }
  0x39   : > { %342 = vperm.xlu0 %550, %v338_v7  }
  0xac   : > { %v285_v9 = vpop.xlane.xlu0 %284 }
  0xad   : > { %v289_v10 = vmul.f32 0.00390625, %v285_v9 }
  0xaf   : > { %v293_v14 = vmul.f32 %v291_v11, %v289_v10 }
  0xb0   : > { %v288_v13 = vpop.xlane.xlu0 %287 }
  0xb1   : > { %v290_v15 = vmul.f32 0.00390625, %v288_v13  ;;  %v296_v17 = vsel %vm295_vm0, %v293_v14, 0.0 }
  0xb3   : > { %v294_v16 = vmul.f32 %v292_v12, %v290_v15 }
  0xb5   : > { %v297_v18 = vsel %vm295_vm0, %v294_v16, 0.0 }
  0xb6   : > { %v298_v19 = vadd.f32 %v297_v18, %v296_v17 }
  0xb8   : > { %v299_v20 = vrot.slane %v298_v19, 4  ;;  %v343_v56 = vpop.permute.xlu0 %342 }
  0xb9   : > { %v350_v58 = vmul.f32 %v343_v56, %v732_v1  ;;  %v351_v60 = vmul.f32 %v343_v56, %v734_v2 }
  0xba   : > { %v300_v21 = vadd.f32 %v299_v20, %v298_v19 }
  0xbc   : > { %v301_v22 = vrot.slane %v300_v21, 2 }
  0xbe   : > { %v302_v24 = vadd.f32 %v301_v22, %v300_v21 }
  0xc0   : > { %v303_v25 = vrot.slane %v302_v24, 1 }
  0xc2   : > { %v304_v28 = vadd.f32 %v303_v25, %v302_v24 }
  0xc4   : > { %v306_v29 = vadd.f32 %v305_v27, %v304_v28 }
  0xc6   : > { %v307_v31 = vmax.f32 %v306_v29, 0.0 }
  0xc8   : > { %v313_v33 = vrot.slane %v307_v31, %v312_v30 }
  0xca   : > { %v314_v35 = vmul.f32 %v313_v33, %v308_v32  ;;  %v315_v37 = vmul.f32 %v313_v33, %v309_v34 }
  0xcc   : > { %v316_v36 = vsel %vm295_vm0, %v314_v35, 0.0  ;;  %v319_v38 = vsel %vm295_vm0, %v315_v37, 0.0 }
  0xcd   : > { %317 = vadd.xlane.f32.xlu1 %v316_v36 }
  0xd1   : > { %320 = vadd.xlane.f32.xlu1 %v319_v38 }
  0xe2   : > { %347 = vperm.xlu1 %551, %v339_v39  }
  0xe6   : > { %371 = vperm.xlu1 %551, %v368_v40  }
 0x15a   : > { %v318_v42 = vpop.xlane.xlu1 %317 }
 0x15b   : > { %v324_v43 = vadd.f32 %v322_v41, %v318_v42 }
 0x15d   : > { %v497_v45 = vmul.f32 -1.442695, %v324_v43 }
 0x15e   : > { %v321_v46 = vpop.xlane.xlu1 %320 }
 0x15f   : > { %552 = vpow2.f32 %v497_v45  ;;  %v325_v47 = vadd.f32 %v323_v44, %v321_v46 }
 0x161   : > { %v498_v48 = vmul.f32 -1.442695, %v325_v47 }
 0x162   : > { %v348_v55 = vpop.permute.xlu1 %347 }
 0x163   : > { %554 = vpow2.f32 %v498_v48  ;;  %v352_v57 = vmul.f32 %v348_v55, %v736_v3  ;;  %v353_v59 = vmul.f32 %v348_v55, %v740_v5 }
 0x165   : > { %v354_v61 = vadd.f32 %v352_v57, %v350_v58  ;;  %v361_v62 = vadd.f32 %v353_v59, %v351_v60 }
 0x166   : > { %v372_v12 = vpop.permute.xlu1 %371 }
 0x167   : > { %v355_v63 = vrot.slane %v354_v61, 4  ;;  %v362_v0 = vrot.slane %v361_v62, 4  ;;  %v377_v15 = vrot.slane %v372_v12, %v312_v30 }
 0x169   : > { %v553_v49 = vpop.eup %552  ;;  %v356_v4 = vadd.f32 %v355_v63, %v354_v61  ;;  %v363_v6 = vadd.f32 %v362_v0, %v361_v62 }
 0x16a   : > { %v332_v50 = vadd.f32 1.0, %v553_v49 }
 0x16b   : > { %v357_v7 = vrot.slane %v356_v4, 2  ;;  %v364_v8 = vrot.slane %v363_v6, 2 }
 0x16c   : > { %556 = vrcp.f32 %v332_v50 }
 0x16d   : > { %v555_v51 = vpop.eup %554  ;;  %v358_v9 = vadd.f32 %v357_v7, %v356_v4  ;;  %v365_v10 = vadd.f32 %v364_v8, %v363_v6 }
 0x16e   : > { %v333_v52 = vadd.f32 1.0, %v555_v51 }
 0x16f   : > { %v359_v11 = vrot.slane %v358_v9, 1  ;;  %v366_v13 = vrot.slane %v365_v10, 1 }
 0x170   : > { %558 = vrcp.f32 %v333_v52 }
 0x171   : > { %v360_v14 = vadd.f32 %v359_v11, %v358_v9  ;;  %v367_v16 = vadd.f32 %v366_v13, %v365_v10 }
 0x173   : > { %v378_v17 = vadd.f32 %v377_v15, %v360_v14  ;;  %v379_v18 = vadd.f32 %v377_v15, %v367_v16 }
 0x175   : > { %v499_v19 = vmul.f32 -1.442695, %v378_v17  ;;  %v500_v20 = vmul.f32 -1.442695, %v379_v18 }
 0x176   : > { %v557_v53 = vpop.eup %556 }
 0x177   : > { %394 = vperm.xlu1 %551, %v557_v53   ;;  %560 = vpow2.f32 %v499_v19 }
 0x178   : > { %562 = vpow2.f32 %v500_v20 }
 0x17a   : > { %v559_v54 = vpop.eup %558 }
 0x17b   : > { %399 = vperm.xlu1 %551, %v559_v54  }
 0x181   : > { %v561_v21 = vpop.eup %560 }
 0x182   : > { %v563_v22 = vpop.eup %562  ;;  %v386_v23 = vadd.f32 1.0, %v561_v21 }
 0x183   : > { %v387_v24 = vadd.f32 1.0, %v563_v22 }
 0x184   : > { %564 = vrcp.f32 %v386_v23 }
 0x185   : > { %566 = vrcp.f32 %v387_v24 }
 0x18e   : > { %v565_v25 = vpop.eup %564 }
 0x18f   : > { %v567_v26 = vpop.eup %566 }
 0x1f6   : > { %v395_v27 = vpop.permute.xlu1 %394 }
 0x1f7   : > { %v402_v28 = vadd.f32 %v565_v25, %v395_v27  ;;  %v403_v29 = vadd.f32 %v567_v26, %v395_v27 }
 0x1f9   : > { %v406_v30 = vmul.f32 %v402_v28, %v732_v1  ;;  %v407_v31 = vmul.f32 %v403_v29, %v734_v2 }
 0x1fa   : > { %v400_v32 = vpop.permute.xlu1 %399 }
 0x1fb   : > { %410 = vst [vmem:[%s273_s24] sm:$0xff] %v406_v30  ;;  %411 = vst [vmem:[%s273_s24 + $0x8] sm:$0xff] %v407_v31  ;;  %v404_v33 = vadd.f32 %v565_v25, %v400_v32  ;;  %v405_v34 = vadd.f32 %v567_v26, %v400_v32 }
 0x1fd   : > { %v408_v1 = vmul.f32 %v404_v33, %v736_v3  ;;  %v409_v2 = vmul.f32 %v405_v34, %v740_v5 }
 0x1ff   : > { %412 = vst [vmem:[%s273_s24 + $0x10] sm:$0xff] %v408_v1  ;;  %413 = vst [vmem:[%s273_s24 + $0x18] sm:$0xff] %v409_v2 }
 0x200   : > { %581 = shalt.err (!%p578_p3)
}
 0x201   : > { %s582_s19 = scalar_lea.hbm %s788_s14, 512  ;;  %s586_s22 = scalar_lea.hbm %s840_s7, 1024 }
 0x202   : > { %p583_p4 = scmp.ne.s32.totalorder %s788_s14, %s582_s19  ;;  %p587_p9 = scmp.lt.u32.totalorder %s788_s14, %s840_s7 }
 0x203   : > { %p588_p10 = scmp.lt.u32.totalorder %s586_s22, %s582_s19  ;;  %p590_p12 = scmp.lt.u32.totalorder %s582_s19, %s788_s14 }
 0x204   : > { %p584_p7 = pnand %p583_p4, %p717_p5 }
 0x205   : > { %p589_p11 = por %p588_p10, %p587_p9 }
 0x206   : > { %p585_p8 = pneg %p584_p7 }
 0x207   : > { %p591_p13 = por %p590_p12, %p589_p11 }
 0x209   : > { %p592_p0 = pnand %p591_p13, %p585_p8 }
 0x20b   : > { %595 = shalt.err (!%p592_p0)
}
 0x20c   : > { %s634_s30 = smov 256   ;;  %s635_s9 = smov 16  }
 0x20d   : > { %508 = dma.vmem_to_hbm [thread:$0]  (%p717_p5), %s783_s25, 512, %s788_s14, %s792_s6, %s634_s30, %s634_s30, %s635_s9  }
 0x20e PF: > { %p514_p1 = scmp.ge.s32.totalorder %s630_s29, 2  ;;  %s443_s10 = sand.u32 1, %s618_s26  }
 0x20f   : > { %s444_s15 = scalar_lea.sflag [#allocation4], %s443_s10 }
 0x210   : > { %p511_p2 = pnand %p514_p1, %p721_p6 }
 0x212   : > { %613 = dma.done.wait (!%p511_p2), %s444_s15, 512  }
 0x213   : > { %615 = vsyncadd (!%p511_p2), %s444_s15, 4294966784  ;;  %p19_p3 = scmp.ge.s32.totalorder %s704_s8, 4   ;;  %s843_s26 = smov %s622_s27 }
 0x214   : > { %s844_s27 = smov %s626_s28  ;;  %s845_s28 = smov %s715_s11 }
 0x215   : > { %s846_s29 = smov %s704_s8  ;;  %21 = sbr.rel (!%p19_p3) target bundleno = 6 (0x6), region = 83 }
 0x21c   :  { %449 = vsyncpa [#allocation4], 1 }
 0x21d   :  { %451 = vsyncpa [#allocation4 + $0x1], 1 }

</bundles_post_ra>
